<compile_context>
chip_gen: v5e
topology: v5e:2x2
jax: 0.10.0
libtpu: 0.0.40
codegen_flags: <defaults>
</compile_context>

<pallas_src>
import functools

import jax
import jax.numpy as jnp
from jax.experimental import pallas as pl
from jax.experimental.pallas import tpu as pltpu


def _round_up(x, m):
    return ((x + m - 1) // m) * m


# ----------------------------------------------------------------------------
# method=1: MSE loss kernel
# ----------------------------------------------------------------------------
def _mse_kernel(x_ref, y_ref, o_ref, acc_ref, *, n_elems, block_rows,
                blocks_per_split):
    c = pl.program_id(0)          # split index (parallel axis)
    k = pl.program_id(1)          # block index within the split (reduction)

    @pl.when(k == 0)
    def _():
        acc_ref[...] = jnp.zeros_like(acc_ref)

    # Global flat element index of every element in this tile (unclamped, so
    # replayed / tail elements land past n_elems and are masked out).
    block_idx = c * blocks_per_split + k
    base = block_idx * (block_rows * 128)
    row_ids = jax.lax.broadcasted_iota(jnp.int32, (block_rows, 128), 0)
    col_ids = jax.lax.broadcasted_iota(jnp.int32, (block_rows, 128), 1)
    flat = base + row_ids * 128 + col_ids

    d = x_ref[...].astype(jnp.float32) - y_ref[...].astype(jnp.float32)
    acc_ref[...] += jnp.where(flat < n_elems, d * d, 0.0)

    @pl.when(k == pl.num_programs(1) - 1)
    def _():
        o_ref[0, 0] = jnp.sum(acc_ref[...])


def mse_loss_pallas(sent_probs, sent_targets, *, block_rows=1024):
    assert sent_probs.shape == sent_targets.shape
    n = sent_probs.size
    lane = 128

    # Minimal (<=127 element) pad so the flat vector reshapes to (rows, 128).
    xf = sent_probs.reshape(-1)
    yf = sent_targets.reshape(-1)
    n_pad = _round_up(n, lane)
    if n_pad != n:
        xf = jnp.pad(xf, (0, n_pad - n))
        yf = jnp.pad(yf, (0, n_pad - n))
    rows = n_pad // lane
    x2 = xf.reshape(rows, lane)
    y2 = yf.reshape(rows, lane)

    block_rows = min(block_rows, _round_up(rows, 8))
    total_blocks = pl.cdiv(rows, block_rows)

    # Split the streaming reduction across (up to) 2 TensorCores (v7x); on
    # single-TC chips this is just a sequential loop over both splits.
    num_splits = min(2, total_blocks)
    bps = pl.cdiv(total_blocks, num_splits)

    def in_map(c, k):
        # Clamp so any "extra" block in the last split re-reads a valid block;
        # its contribution is masked out in-kernel via the flat index.
        idx = jnp.minimum(c * bps + k, total_blocks - 1)
        return (idx, 0)

    partials = pl.pallas_call(
        functools.partial(_mse_kernel, n_elems=n, block_rows=block_rows,
                          blocks_per_split=bps),
        out_shape=jax.ShapeDtypeStruct((num_splits, 1), jnp.float32),
        grid=(num_splits, bps),
        in_specs=[
            pl.BlockSpec((block_rows, lane), in_map),
            pl.BlockSpec((block_rows, lane), in_map),
        ],
        out_specs=pl.BlockSpec((1, 1), lambda c, k: (c, 0),
                               memory_space=pltpu.SMEM),
        scratch_shapes=[pltpu.VMEM((block_rows, lane), jnp.float32)],
        compiler_params=pltpu.CompilerParams(
            dimension_semantics=("parallel", "arbitrary")),
    )(x2, y2)
    return jnp.sum(partials) / jnp.float32(n)


# ----------------------------------------------------------------------------
# method!=1: pairwise ranking hinge loss kernel
#   loss = sum_{i,j : t[i] > t[j]} relu(1 - p[i] + p[j])
# ----------------------------------------------------------------------------
def _rank_kernel(pc_ref, tc_ref, pr_ref, tr_ref, o_ref):
    j = pl.program_id(1)

    @pl.when(j == 0)
    def _():
        o_ref[0, 0] = jnp.float32(0.0)

    p_col = pc_ref[...]   # (TI, 1)
    t_col = tc_ref[...]   # (TI, 1)
    p_row = pr_ref[...]   # (1, TJ)
    t_row = tr_ref[...]   # (1, TJ)

    mask = t_col > t_row                             # (TI, TJ)
    hinge = jnp.maximum(1.0 - p_col + p_row, 0.0)    # (TI, TJ)
    o_ref[0, 0] += jnp.sum(jnp.where(mask, hinge, 0.0))


def rank_loss_pallas(sent_probs, sent_targets, *, tile=256):
    n = sent_probs.shape[0]
    t = min(tile, _round_up(n, 128))        # tile size (multiple of 128)
    n_pad = _round_up(n, t)
    pad = n_pad - n

    p = sent_probs.astype(jnp.float32).reshape(-1)
    tg = sent_targets.astype(jnp.float32).reshape(-1)
    if pad:
        p = jnp.pad(p, (0, pad))                                   # p pad: 0
        t_col_v = jnp.pad(tg, (0, pad), constant_values=-jnp.inf)  # never ">"
        t_row_v = jnp.pad(tg, (0, pad), constant_values=jnp.inf)   # never "<"
    else:
        t_col_v = tg
        t_row_v = tg

    p_col = p.reshape(n_pad, 1)
    p_row = p.reshape(1, n_pad)
    t_col = t_col_v.reshape(n_pad, 1)
    t_row = t_row_v.reshape(1, n_pad)

    nblk = n_pad // t
    partials = pl.pallas_call(
        _rank_kernel,
        out_shape=jax.ShapeDtypeStruct((nblk, 1), jnp.float32),
        grid=(nblk, nblk),
        in_specs=[
            pl.BlockSpec((t, 1), lambda i, j: (i, 0)),
            pl.BlockSpec((t, 1), lambda i, j: (i, 0)),
            pl.BlockSpec((1, t), lambda i, j: (0, j)),
            pl.BlockSpec((1, t), lambda i, j: (0, j)),
        ],
        out_specs=pl.BlockSpec((1, 1), lambda i, j: (i, 0),
                               memory_space=pltpu.SMEM),
        compiler_params=pltpu.CompilerParams(
            dimension_semantics=("parallel", "arbitrary")),
    )(p_col, t_col, p_row, t_row)
    return jnp.sum(partials)


# ----------------------------------------------------------------------------
# Module-equivalent wrapper
# ----------------------------------------------------------------------------
def my_loss1(sent_probs, sent_targets, method=1):
    if method == 1:
        return mse_loss_pallas(sent_probs, sent_targets)
    else:
        return rank_loss_pallas(sent_probs, sent_targets)


if __name__ == "__main__":
    key = jax.random.PRNGKey(0)
    k1, k2 = jax.random.split(key)
    N = 8  # seq length of sentence scores
    sent_probs = jax.random.uniform(k1, (N,), dtype=jnp.float32)
    sent_targets = jax.random.uniform(k2, (N,), dtype=jnp.float32)

    # method=1: MSE loss
    loss_mse = my_loss1(sent_probs, sent_targets, method=1)
    loss_mse = jax.block_until_ready(loss_mse)
    ref_mse = jnp.mean((sent_probs - sent_targets) ** 2)
    assert jnp.allclose(loss_mse, ref_mse, rtol=1e-6, atol=1e-6), (
        loss_mse, ref_mse)

    # method=2: pairwise ranking hinge loss
    loss_rank = my_loss1(sent_probs, sent_targets, method=2)
    loss_rank = jax.block_until_ready(loss_rank)
    mask = sent_targets[:, None] > sent_targets[None, :]
    ref_rank = jnp.sum(
        jnp.where(mask,
                  jnp.maximum(1.0 - sent_probs[:, None] + sent_probs[None, :],
                              0.0),
                  0.0))
    assert jnp.allclose(loss_rank, ref_rank, rtol=1e-5, atol=1e-5), (
        loss_rank, ref_rank)

    print("KERNEL_OK")
</pallas_src>

<mosaic_0001>
module attributes {stable_mosaic.version = 11 : i64} {
  func.func @_mse_kernel(%arg0: i32, %arg1: i32, %arg2: memref<8x128xf32, #tpu.memory_space<vmem>>, %arg3: memref<8x128xf32, #tpu.memory_space<vmem>>, %arg4: memref<1x1xf32, #tpu.memory_space<smem>>, %arg5: memref<8x128xf32, #tpu.memory_space<vmem>>) attributes {dimension_semantics = [#tpu.dimension_semantics<parallel>, #tpu.dimension_semantics<arbitrary>], iteration_bounds = array<i64: 1, 1>, scalar_prefetch = 0 : i64, scratch_operands = 1 : i64, tpu.core_type = #tpu.core_type<tc>, window_params = [{transform_indices = @transform_0, window_bounds = array<i64: 8, 128>}, {transform_indices = @transform_1, window_bounds = array<i64: 8, 128>}, {transform_indices = @transform_2, window_bounds = array<i64: 1, 1>}]} {
    %c0_i32 = arith.constant 0 : i32
    %0 = arith.cmpi eq, %arg1, %c0_i32 : i32
    %1 = arith.extui %0 : i1 to i32
    %c0_i32_0 = arith.constant 0 : i32
    %2 = arith.cmpi ne, %1, %c0_i32_0 : i32
    scf.if %2 {
      %cst_10 = arith.constant 0.000000e+00 : f32
      %27 = vector.broadcast %cst_10 : f32 to vector<8x128xf32>
      %c0_11 = arith.constant 0 : index
      %c0_12 = arith.constant 0 : index
      %28 = vector.load %arg5[%c0_11, %c0_12] : memref<8x128xf32, #tpu.memory_space<vmem>>, vector<8x128xf32>
      tpu.vector_store %arg5[%c0_11, %c0_12], %27 {strides = array<i32>} : memref<8x128xf32, #tpu.memory_space<vmem>>, vector<8x128xf32>,
    } else {
    }
    %c1_i32 = arith.constant 1 : i32
    %3 = arith.muli %arg0, %c1_i32 : i32
    %4 = arith.addi %3, %arg1 : i32
    %c1024_i32 = arith.constant 1024 : i32
    %5 = arith.muli %4, %c1024_i32 : i32
    %6 = tpu.iota {dimensions = array<i32: 0>} : vector<8x128xi32>
    %7 = tpu.iota {dimensions = array<i32: 1>} : vector<8x128xi32>
    %c128_i32 = arith.constant 128 : i32
    %8 = vector.broadcast %c128_i32 : i32 to vector<8x128xi32>
    %9 = arith.muli %6, %8 : vector<8x128xi32>
    %10 = vector.broadcast %5 : i32 to vector<8x128xi32>
    %11 = arith.addi %10, %9 : vector<8x128xi32>
    %12 = arith.addi %11, %7 : vector<8x128xi32>
    %c0 = arith.constant 0 : index
    %c0_1 = arith.constant 0 : index
    %13 = vector.load %arg2[%c0, %c0_1] : memref<8x128xf32, #tpu.memory_space<vmem>>, vector<8x128xf32>
    %c0_2 = arith.constant 0 : index
    %c0_3 = arith.constant 0 : index
    %14 = vector.load %arg3[%c0_2, %c0_3] : memref<8x128xf32, #tpu.memory_space<vmem>>, vector<8x128xf32>
    %15 = arith.subf %13, %14 : vector<8x128xf32>
    %c0_4 = arith.constant 0 : index
    %c0_5 = arith.constant 0 : index
    %16 = vector.load %arg5[%c0_4, %c0_5] : memref<8x128xf32, #tpu.memory_space<vmem>>, vector<8x128xf32>
    %c8_i32 = arith.constant 8 : i32
    %17 = vector.broadcast %c8_i32 : i32 to vector<8x128xi32>
    %18 = arith.cmpi slt, %12, %17 : vector<8x128xi32>
    %19 = arith.mulf %15, %15 : vector<8x128xf32>
    %cst = arith.constant 0.000000e+00 : f32
    %20 = vector.broadcast %cst : f32 to vector<8x128xf32>
    %21 = arith.select %18, %19, %20 : vector<8x128xi1>, vector<8x128xf32>
    %22 = arith.addf %16, %21 : vector<8x128xf32>
    %c0_6 = arith.constant 0 : index
    %c0_7 = arith.constant 0 : index
    %23 = vector.load %arg5[%c0_6, %c0_7] : memref<8x128xf32, #tpu.memory_space<vmem>>, vector<8x128xf32>
    tpu.vector_store %arg5[%c0_6, %c0_7], %22 {strides = array<i32>} : memref<8x128xf32, #tpu.memory_space<vmem>>, vector<8x128xf32>,
    %c0_i32_8 = arith.constant 0 : i32
    %24 = arith.cmpi eq, %arg1, %c0_i32_8 : i32
    %25 = arith.extui %24 : i1 to i32
    %c0_i32_9 = arith.constant 0 : i32
    %26 = arith.cmpi ne, %25, %c0_i32_9 : i32
    scf.if %26 {
      %c0_10 = arith.constant 0 : index
      %c0_11 = arith.constant 0 : index
      %27 = vector.load %arg5[%c0_10, %c0_11] : memref<8x128xf32, #tpu.memory_space<vmem>>, vector<8x128xf32>
      %28 = vector.shape_cast %27 : vector<8x128xf32> to vector<1x8x128xf32>
      %cst_12 = arith.constant dense<0.000000e+00> : vector<1xf32>
      %29 = vector.multi_reduction <add>, %28, %cst_12 [1, 2] : vector<1x8x128xf32> to vector<1xf32>
      %30 = vector.shape_cast %29 : vector<1xf32> to vector<1x1x1xf32>
      %31 = vector.extract %30[0, 0, 0] : f32 from vector<1x1x1xf32>
      %c0_13 = arith.constant 0 : index
      %c0_14 = arith.constant 0 : index
      %32 = memref.load %arg4[%c0_13, %c0_14] : memref<1x1xf32, #tpu.memory_space<smem>>
      memref.store %31, %arg4[%c0_13, %c0_14] : memref<1x1xf32, #tpu.memory_space<smem>>
    } else {
    }
    return
  }
  func.func @transform_0(%arg0: i32, %arg1: i32) -> (i32, i32) {
    %c1_i32 = arith.constant 1 : i32
    %0 = arith.muli %arg0, %c1_i32 : i32
    %1 = arith.addi %0, %arg1 : i32
    %c0_i32 = arith.constant 0 : i32
    %2 = arith.minsi %1, %c0_i32 : i32
    %c0_i32_0 = arith.constant 0 : i32
    %c0_i32_1 = arith.constant 0 : i32
    return %2, %c0_i32_0 : i32, i32
  }
  func.func @transform_1(%arg0: i32, %arg1: i32) -> (i32, i32) {
    %c1_i32 = arith.constant 1 : i32
    %0 = arith.muli %arg0, %c1_i32 : i32
    %1 = arith.addi %0, %arg1 : i32
    %c0_i32 = arith.constant 0 : i32
    %2 = arith.minsi %1, %c0_i32 : i32
    %c0_i32_0 = arith.constant 0 : i32
    %c0_i32_1 = arith.constant 0 : i32
    return %2, %c0_i32_0 : i32, i32
  }
  func.func @transform_2(%arg0: i32, %arg1: i32) -> (i32, i32) {
    %c0_i32 = arith.constant 0 : i32
    %c0_i32_0 = arith.constant 0 : i32
    return %arg0, %c0_i32 : i32, i32
  }
}

</mosaic_0001>

<bundles_post_ra>
// kernel: tpu_custom_call.1
= control target key start
LH: loop header
LB: loop body
LE: loop exit
PB: predicated region body
PF: predicated region fallthrough
CT: control target
= control target key end

     0   :  { %7 = vsyncpa [#allocation4], 0  ;;  %s232_s0 = inlined_call_operand.hbm [shape: f32[1,128], index: 0, kind: input, shape index: {}]   ;;  %s233_s1 = inlined_call_operand.hbm [shape: f32[1,128], index: 1, kind: input, shape index: {}]   ;;  %s234_s2 = inlined_call_operand.hbm [shape: f32[1,1], index: 2, kind: output, shape index: {}]  }
   0x1   :  { %8 = vsyncpa [#allocation7], 0 }
   0x2   :  { %9 = vsyncpa [#allocation5], 0 }
   0x3   :  { %19 = vsyncadd [#allocation4], 112  ;;  %s22_s11 = sshll.u32 %s232_s0, 4  ;;  %s203_s12 = smov [#allocation3]   ;;  %s23_s11 = int_to_ptr.hbm [resolvable:$true] %s22_s11 }
   0x4   :  { %s24_s13 = sshll.u32 %s203_s12, 4  ;;  %s204_s14 = smov 16   ;;  %s25_s13 = int_to_ptr.vmem [resolvable:$true] %s24_s13 }
   0x5   :  { %s205_s15 = smov 1  }
   0x6   :  { %30 = dma.hbm_to_vmem [thread:$0]  %s23_s11, 16, %s25_s13, [#allocation4], %s204_s14, %s204_s14, %s205_s15  }
   0x7   :  { %40 = vsyncadd [#allocation7], 112  ;;  %s43_s18 = sshll.u32 %s233_s1, 4  ;;  %s206_s19 = smov [#allocation6]   ;;  %s44_s18 = int_to_ptr.hbm [resolvable:$true] %s43_s18 }
   0x8   :  { %s45_s20 = sshll.u32 %s206_s19, 4  ;;  %s46_s20 = int_to_ptr.vmem [resolvable:$true] %s45_s20 }
   0x9   :  { %51 = dma.hbm_to_vmem [thread:$0]  %s44_s18, 16, %s46_s20, [#allocation7], %s204_s14, %s204_s14, %s205_s15  }
   0xa   :  { %197 = dma.done.wait [#allocation4], 128  }
   0xb   :  { %198 = vsyncadd [#allocation4], 4294967168 }
   0xc   :  { %199 = dma.done.wait [#allocation7], 128  }
   0xd   :  { %200 = vsyncadd [#allocation7], 4294967168  ;;  %v77_v0 = vlaneseq  ;;  %v85_v5 = vld [vmem:[#allocation3] sm:$0xff]  ;;  %v86_v6 = vld [vmem:[#allocation6] sm:$0xff]  ;;  %s114_s21 = sshll.u32 %s234_s2, 4  ;;  %s207_s23 = smov [#allocation8]   ;;  %s115_s21 = int_to_ptr.hbm [resolvable:$true] %s114_s21 }
   0xe   :  { %v87_v7 = vsub.f32 %v85_v5, %v86_v6 }
   0xf   :  { %v78_v1 = vshrl.u32 %v77_v0, 7  ;;  %v80_v2 = vand.u32 127, %v77_v0 }
  0x10   :  { %v90_v8 = vmul.f32 %v87_v7, %v87_v7 }
  0x11   :  { %v81_v3 = vmul.u32 128, %v78_v1 }
  0x13   :  { %v84_v4 = vadd.s32 %v81_v3, %v80_v2 }
  0x15   :  { %vm89_vm0 = vcmp.lt.s32.totalorder %v84_v4, 8 }
  0x16   :  { %v91_v9 = vsel %vm89_vm0, %v90_v8, 0.0 }
  0x17   :  { %98 = vadd.xlane.f32.xlu0 %v91_v9 }
  0x8a   :  { %v99_v10 = vpop.xlane.xlu0 %98 }
  0x8b   :  { %v100_v11 = vrot.slane %v99_v10, 4 }
  0x8d   :  { %v101_v12 = vadd.f32 %v100_v11, %v99_v10 }
  0x8f   :  { %v102_v13 = vrot.slane %v101_v12, 2 }
  0x91   :  { %v103_v14 = vadd.f32 %v102_v13, %v101_v12 }
  0x93   :  { %v104_v15 = vrot.slane %v103_v14, 1 }
  0x95   :  { %v105_v16 = vadd.f32 %v104_v15, %v103_v14 }
  0x97   :  { %130 = vpush %v105_v16 }
  0xc8   :  { %s131_s22 = spop %130 }
  0xc9   :  { %108 = sst [smem:[#allocation8]] %s131_s22 }
  0xca   :  { %117 = dma.smem_to_hbm %s207_s23, 16, %s115_s21, [#allocation5]  }
  0xcb   :  { %201 = dma.done.wait [#allocation5], 16  }
  0xcc   :  { %202 = vsyncadd [#allocation5], 4294967280 }
  0xcd   :  { %122 = sfence }
  0xce   :  { %123 = vsyncpa [#allocation4], 1 }
  0xcf   :  { %124 = vsyncpa [#allocation7], 1 }
  0xd0   :  { %125 = vsyncpa [#allocation5], 1 }

</bundles_post_ra>
